<compile_context>
chip_gen: v6e
topology: v6e:2x2x1
jax: 0.10.0
libtpu: 0.0.40
codegen_flags: <defaults>
</compile_context>

<pallas_src>
import jax
import jax.numpy as jnp
from jax.experimental import pallas as pl
from jax.experimental.pallas import tpu as pltpu

_LANE = 128
_TILE_ELEMS = 1 << 20            # ~1M elements per block: 4 MiB f32 / 2 MiB bf16
_SMALL_BYTES = 256 * 1024        # below this: single block, skip megacore split
_VMEM_LIMIT_BYTES = 32 * 1024 * 1024


def _swish_kernel(x_ref, o_ref):
    # Compute in f32 for accuracy.  sigmoid(x) = 0.5 * (1 + tanh(x / 2)) uses a
    # single EUP transcendental per element (vs exp + exact divide); the VPU
    # muls/adds are free filler in the HBM-bound regime.
    x = x_ref[...].astype(jnp.float32)
    sig = 0.5 * jnp.tanh(0.5 * x) + 0.5
    o_ref[...] = (x * sig).astype(o_ref.dtype)


def _round_up(v, m):
    return ((v + m - 1) // m) * m


def _choose_tile(total, unit, target, total_bytes):
    """Pick the tile extent along the single grid axis.

    `unit` is the minimum hardware granularity (sublane rows for the 2-D path,
    sublane*lane elements for the 1-D path); `target` is the desired tile in
    the same units.  Tiny inputs get a single full block; larger inputs get an
    even number of grid steps so v7x's two TensorCores stay balanced.
    """
    if total <= unit or total_bytes <= _SMALL_BYTES:
        return total                              # single block == full extent
    steps = max(2, pl.cdiv(total, min(target, total)))
    if steps % 2:
        steps += 1                                # balanced 2-TC split on v7x
    tile = _round_up(pl.cdiv(total, steps), unit)
    return min(tile, _round_up(total, unit))


def _compiler_params():
    return pltpu.CompilerParams(
        dimension_semantics=("parallel",),
        vmem_limit_bytes=_VMEM_LIMIT_BYTES,
    )


def _swish_2d(x2d, rows, tr):
    return pl.pallas_call(
        _swish_kernel,
        out_shape=jax.ShapeDtypeStruct((rows, _LANE), x2d.dtype),
        grid_spec=pltpu.PrefetchScalarGridSpec(
            num_scalar_prefetch=0,
            grid=(pl.cdiv(rows, tr),),
            in_specs=[pl.BlockSpec((tr, _LANE), lambda i: (i, 0))],
            out_specs=pl.BlockSpec((tr, _LANE), lambda i: (i, 0)),
        ),
        compiler_params=_compiler_params(),
    )(x2d)


def _swish_1d(x_flat, n, te):
    return pl.pallas_call(
        _swish_kernel,
        out_shape=jax.ShapeDtypeStruct((n,), x_flat.dtype),
        grid_spec=pltpu.PrefetchScalarGridSpec(
            num_scalar_prefetch=0,
            grid=(pl.cdiv(n, te),),
            in_specs=[pl.BlockSpec((te,), lambda i: (i,))],
            out_specs=pl.BlockSpec((te,), lambda i: (i,)),
        ),
        compiler_params=_compiler_params(),
    )(x_flat)


def swish(x, *, tile_elems=_TILE_ELEMS):
    """Elementwise Swish / SiLU: x * sigmoid(x). Preserves shape and dtype."""
    orig_shape = x.shape
    dtype = x.dtype
    n = x.size
    if n == 0:
        return x

    itemsize = jnp.dtype(dtype).itemsize
    # Native sublane tile height: 8 rows for 4-byte, 16 for 2-byte, 32 for 1-byte.
    sub_min = 8 * max(1, 4 // itemsize)
    total_bytes = n * itemsize

    if n % _LANE == 0:
        # Common case (NCHW activations): free reshape to a lane-dense 2-D slab.
        rows = n // _LANE
        x2d = jnp.reshape(x, (rows, _LANE))
        tr = _choose_tile(rows, sub_min, max(sub_min, tile_elems // _LANE), total_bytes)
        out = _swish_2d(x2d, rows, tr)
        return jnp.reshape(out, orig_shape)

    # Ragged case: run directly on the flat array with 1-D blocks (multiple of
    # sublane*lane elements); Pallas masks the ragged last block.  No pad copy
    # on input, no slice copy on output.
    x_flat = jnp.reshape(x, (n,))
    chunk = sub_min * _LANE
    te = _choose_tile(n, chunk, max(chunk, tile_elems), total_bytes)
    try:
        out = _swish_1d(x_flat, n, te)
    except Exception:
        # Rare fallback if 1-D lowering is rejected on this toolchain: pad to a
        # lane multiple (costs one extra pass over HBM, ragged sizes only).
        pad = (-n) % _LANE
        xp = jnp.concatenate([x_flat, jnp.zeros((pad,), dtype=dtype)])
        rows = xp.size // _LANE
        tr = _choose_tile(rows, sub_min, max(sub_min, tile_elems // _LANE), total_bytes)
        out2d = _swish_2d(jnp.reshape(xp, (rows, _LANE)), rows, tr)
        out = jnp.reshape(out2d, (-1,))[:n]
    return jnp.reshape(out, orig_shape)


def _ref_swish(x):
    xf = x.astype(jnp.float32)
    return (xf * jax.nn.sigmoid(xf)).astype(x.dtype)


if __name__ == "__main__":
    key = jax.random.PRNGKey(0)
    k0, k1, k2, k3, k4 = jax.random.split(key, 5)

    # Main check: NCHW f32, small shape matching the original module's usage.
    x = jax.random.normal(k0, (2, 4, 16, 16), dtype=jnp.float32)
    y = jax.block_until_ready(swish(x))
    assert y.shape == x.shape and y.dtype == x.dtype
    assert jnp.max(jnp.abs(y - _ref_swish(x))) < 1e-5

    # Ragged size (not a multiple of 128) -> copy-free 1-D single-block path.
    x_odd = jax.random.normal(k1, (3, 5, 7, 11), dtype=jnp.float32)
    y_odd = jax.block_until_ready(swish(x_odd))
    assert jnp.max(jnp.abs(y_odd - _ref_swish(x_odd))) < 1e-5

    # bf16 path exercises the dtype-aware sublane tile; f32 internal compute.
    x_bf = jax.random.normal(k2, (2, 4, 16, 16), dtype=jnp.bfloat16)
    y_bf = jax.block_until_ready(swish(x_bf))
    assert y_bf.dtype == jnp.bfloat16
    assert jnp.max(jnp.abs(y_bf.astype(jnp.float32)
                           - _ref_swish(x_bf).astype(jnp.float32))) < 2e-2

    # Medium aligned input: exercises the multi-step (even grid) 2-D path.
    x_mid = jax.random.normal(k3, (4, 32, 32, 32), dtype=jnp.float32)
    y_mid = jax.block_until_ready(swish(x_mid))
    assert jnp.max(jnp.abs(y_mid - _ref_swish(x_mid))) < 1e-5

    # Medium ragged input: exercises the multi-block masked 1-D path.
    x_rag = jax.random.normal(k4, (17, 131, 53), dtype=jnp.float32)
    y_rag = jax.block_until_ready(swish(x_rag))
    assert jnp.max(jnp.abs(y_rag - _ref_swish(x_rag))) < 1e-5

    print("KERNEL_OK")
</pallas_src>

<mosaic_0001>
module attributes {stable_mosaic.version = 11 : i64} {
  func.func @_swish_kernel(%arg0: i32, %arg1: memref<16x128xf32, #tpu.memory_space<vmem>>, %arg2: memref<16x128xf32, #tpu.memory_space<vmem>>) attributes {dimension_semantics = [#tpu.dimension_semantics<parallel>], iteration_bounds = array<i64: 1>, scalar_prefetch = 0 : i64, scratch_operands = 0 : i64, tpu.core_type = #tpu.core_type<tc>, window_params = [{transform_indices = @transform_0, window_bounds = array<i64: 16, 128>}, {transform_indices = @transform_1, window_bounds = array<i64: 16, 128>}]} {
    %c0 = arith.constant 0 : index
    %c0_0 = arith.constant 0 : index
    %0 = vector.load %arg1[%c0, %c0_0] : memref<16x128xf32, #tpu.memory_space<vmem>>, vector<16x128xf32>
    %cst = arith.constant 5.000000e-01 : f32
    %1 = vector.broadcast %cst : f32 to vector<16x128xf32>
    %2 = arith.mulf %1, %0 : vector<16x128xf32>
    %3 = math.tanh %2 : vector<16x128xf32>
    %cst_1 = arith.constant 5.000000e-01 : f32
    %4 = vector.broadcast %cst_1 : f32 to vector<16x128xf32>
    %5 = arith.mulf %4, %3 : vector<16x128xf32>
    %cst_2 = arith.constant 5.000000e-01 : f32
    %6 = vector.broadcast %cst_2 : f32 to vector<16x128xf32>
    %7 = arith.addf %5, %6 : vector<16x128xf32>
    %8 = arith.mulf %0, %7 : vector<16x128xf32>
    %c0_3 = arith.constant 0 : index
    %c0_4 = arith.constant 0 : index
    %9 = vector.load %arg2[%c0_3, %c0_4] : memref<16x128xf32, #tpu.memory_space<vmem>>, vector<16x128xf32>
    tpu.vector_store %arg2[%c0_3, %c0_4], %8 {strides = array<i32>} : memref<16x128xf32, #tpu.memory_space<vmem>>, vector<16x128xf32>,
    return
  }
  func.func @transform_0(%arg0: i32) -> (i32, i32) {
    %c0_i32 = arith.constant 0 : i32
    %c0_i32_0 = arith.constant 0 : i32
    return %arg0, %c0_i32 : i32, i32
  }
  func.func @transform_1(%arg0: i32) -> (i32, i32) {
    %c0_i32 = arith.constant 0 : i32
    %c0_i32_0 = arith.constant 0 : i32
    return %arg0, %c0_i32 : i32, i32
  }
}

</mosaic_0001>

<bundles_post_ra>
// kernel: tpu_custom_call.1
= control target key start
LH: loop header
LB: loop body
LE: loop exit
PB: predicated region body
PF: predicated region fallthrough
CT: control target
= control target key end

     0   :  { %6 = vsyncpa [#allocation3], 0  ;;  %s132_s0 = inlined_call_operand.hbm [shape: f32[16,128], index: 0, kind: input, shape index: {}]   ;;  %s133_s1 = inlined_call_operand.hbm [shape: f32[16,128], index: 1, kind: output, shape index: {}]  }
   0x1   :  { %7 = vsyncpa [#allocation4], 0  ;;  %s106_s6 = smov [#allocation2]  }
   0x2   :  { %s13_s7 = sshll.u32 %s106_s6, 4  ;;  %s14_s7 = int_to_ptr.vmem [resolvable:$true] %s13_s7 }
   0x3   :  { %s70_s8 = scalar_lea.vmem %s14_s7, 256  ;;  %p75_p1 = scmp.lt.s32.totalorder %s14_s7, %s14_s7 }
   0x4   :  { %p71_p0 = scmp.ne.s32.totalorder %s14_s7, %s70_s8  ;;  %p76_p2 = scmp.lt.s32.totalorder %s70_s8, %s70_s8 }
   0x6   :  { %p77_p3 = por %p76_p2, %p75_p1 }
   0x8   :  { %p78_p4 = pnand %p77_p3, %p71_p0 }
   0xa   :  { %81 = shalt.err (!%p78_p4)
}
   0xb   :  { %s107_s9 = smov 128   ;;  %s108_s10 = smov 8  }
   0xc   :  { %19 = dma.hbm_to_vmem [thread:$0]  %s132_s0, 256, %s14_s7, [#allocation3], %s107_s9, %s107_s9, %s108_s10  }
   0xd   :  { %102 = dma.done.wait [#allocation3], 256  }
   0xe   :  { %103 = vsyncadd [#allocation3], 4294967040  ;;  %v23_v0 = vld [vmem:[#allocation2] sm:$0xff]  ;;  %v24_v1 = vld [vmem:[#allocation2 + $0x8] sm:$0xff]  ;;  %s109_s13 = smov [#allocation5]  }
   0xf   :  { %v25_v2 = vmul.f32 0.5, %v23_v0  ;;  %v26_v3 = vmul.f32 0.5, %v24_v1  ;;  %s42_s14 = sshll.u32 %s109_s13, 4  ;;  %s43_s14 = int_to_ptr.vmem [resolvable:$true] %s42_s14 }
  0x10   :  { %s82_s0 = scalar_lea.vmem %s43_s14, 256  ;;  %p87_p6 = scmp.lt.s32.totalorder %s43_s14, %s43_s14 }
  0x11   :  { %58 = vtanh.f32 %v25_v2  ;;  %p83_p5 = scmp.ne.s32.totalorder %s43_s14, %s82_s0  ;;  %p88_p7 = scmp.lt.s32.totalorder %s82_s0, %s82_s0 }
  0x12   :  { %60 = vtanh.f32 %v26_v3 }
  0x13   :  { %p89_p8 = por %p88_p7, %p87_p6 }
  0x15   :  { %p90_p9 = pnand %p89_p8, %p83_p5 }
  0x1e   :  { %v59_v4 = vpop.eup %58 }
  0x1f   :  { %v61_v5 = vpop.eup %60  ;;  %v29_v6 = vmul.f32 0.5, %v59_v4 }
  0x20   :  { %v30_v7 = vmul.f32 0.5, %v61_v5 }
  0x21   :  { %v31_v8 = vadd.f32 0.5, %v29_v6 }
  0x22   :  { %v32_v9 = vadd.f32 0.5, %v30_v7 }
  0x23   :  { %v33_v10 = vmul.f32 %v31_v8, %v23_v0 }
  0x24   :  { %v34_v11 = vmul.f32 %v32_v9, %v24_v1 }
  0x25   :  { %35 = vst [vmem:[#allocation5] sm:$0xff] %v33_v10 }
  0x26   :  { %36 = vst [vmem:[#allocation5 + $0x8] sm:$0xff] %v34_v11 }
  0x27   :  { %93 = shalt.err (!%p90_p9)
}
  0x28   :  { %48 = dma.vmem_to_hbm [thread:$0]  %s43_s14, 256, %s133_s1, [#allocation4], %s107_s9, %s107_s9, %s108_s10  }
  0x29   :  { %104 = dma.done.wait [#allocation4], 256  }
  0x2a   :  { %105 = vsyncadd [#allocation4], 4294967040 }
  0x2b   :  { %52 = vsyncpa [#allocation3], 1 }
  0x2c   :  { %53 = vsyncpa [#allocation4], 1 }

</bundles_post_ra>
